<compile_context>
chip_gen: v7x
topology: tpu7x:2x2x1
jax: 0.10.0
libtpu: 0.0.40
codegen_flags: <defaults>
</compile_context>

<pallas_src>
import functools

import jax
import jax.numpy as jnp
from jax.experimental import pallas as pl
from jax.experimental.pallas import tpu as pltpu


_LANES = 128
# Per-channel elements per block (512K elems = 2 MiB in f32).  With 3 input
# channels + 1 output channel, double-buffered, that is ~16 MiB f32 of VMEM:
# fits v5e/v6e (128 MiB physical) and v7x (64 MiB physical) with headroom
# while amortizing the ~0.35 us per-grid-step overhead.
_MAX_BLOCK_ELEMS = 512 * 1024
# Only split a single-block problem into >= 2 grid steps (for v7x's two
# TensorCores) when there are at least this many elements per channel.
_MIN_SPLIT_ELEMS = 128 * 1024
_VMEM_LIMIT_BYTES = 40 * 1024 * 1024


def _round_up(n: int, m: int) -> int:
    return ((n + m - 1) // m) * m


def _gaussian_meta_mixture_kernel(x_ref, o_ref, *, mode: int):
    """x_ref block: (..., nchan>=3, ...); o_ref block: same with 1 channel."""
    eps = jnp.float32(1e-07)
    # Static unit slices along the channel axis; compute stays rank-preserving
    # so the same kernel serves the 4-D lane-dense and 3-D ragged layouts.
    x0 = x_ref[:, 0:1].astype(jnp.float32)
    x1 = x_ref[:, 1:2].astype(jnp.float32)
    x2 = x_ref[:, 2:3].astype(jnp.float32)
    # Reciprocal runs on the EUP slot (already used by exp) instead of the VPU.
    z = (x0 - x1) * pl.reciprocal(x2 + eps, approx=False)
    g = jnp.exp(z * z * jnp.float32(-0.5))
    if mode:
        g = g * jnp.float32(2.0) - jnp.float32(1.0)
    o_ref[...] = g.astype(o_ref.dtype)


def _choose_tiles_lane_dense(batch: int, rows: int, sublane_mult: int):
    """(batch_tile, row_tile) for the lane-dense (B, C, rows, 128) view."""
    max_rows = _MAX_BLOCK_ELEMS // _LANES
    max_rows = max(sublane_mult, (max_rows // sublane_mult) * sublane_mult)
    if rows > max_rows:
        # Large image: tile the spatial rows; the row grid axis is >= 2.
        return 1, max_rows
    # Small/medium image: take the full spatial extent (full dim -> always
    # legal) and fold batch elements to amortize per-grid-step overhead.
    batch_tile = max(1, min(batch, max_rows // max(rows, 1)))
    row_tile = rows
    if batch * rows * _LANES >= _MIN_SPLIT_ELEMS and batch_tile >= batch:
        # Everything collapsed into one grid step: split so both v7x
        # TensorCores get work.  No effect on v5e/v6e beyond one extra step.
        if batch >= 2:
            batch_tile = pl.cdiv(batch, 2)
        elif rows >= 2 * sublane_mult:
            row_tile = _round_up(pl.cdiv(rows, 2), sublane_mult)
    return batch_tile, row_tile


def _choose_tiles_flat(batch: int, hw: int):
    """(batch_tile, hw_tile) for the ragged (B, C, hw) view."""
    max_hw = (_MAX_BLOCK_ELEMS // _LANES) * _LANES  # multiple of 128
    if hw > max_hw:
        return 1, max_hw  # partial last block handled by the cdiv grid
    batch_tile = max(1, min(batch, _MAX_BLOCK_ELEMS // max(hw, 1)))
    hw_tile = hw
    if batch * hw >= _MIN_SPLIT_ELEMS and batch_tile >= batch:
        if batch >= 2:
            batch_tile = pl.cdiv(batch, 2)
        elif hw >= 2 * _LANES:
            hw_tile = _round_up(pl.cdiv(hw, 2), _LANES)
    return batch_tile, hw_tile


def gaussian_meta_mixture(x: jax.Array, mode: int = 0) -> jax.Array:
    """Pallas implementation of GaussianMetaMixture.forward.

    Args:
      x: (B, C, H, W) array, C >= 3, NCHW layout.
      mode: 0 (default) -> plain gaussian; nonzero -> gaussian * 2 - 1.

    Returns:
      (B, 1, H, W) array, same dtype as x.
    """
    B, C, H, W = x.shape
    if C < 3:
        raise ValueError(f"GaussianMetaMixture needs C >= 3, got C={C}")
    hw = H * W
    dtype = x.dtype
    itemsize = jnp.dtype(dtype).itemsize
    # Packed sublane multiple: 8 for f32, 16 for bf16, 32 for int8/fp8.
    sublane_mult = 8 * max(1, 4 // itemsize)
    kernel = functools.partial(_gaussian_meta_mixture_kernel, mode=int(mode))
    n_out = B * hw

    if hw % _LANES == 0:
        # Fast, lane-dense path: free metadata reshape; a single channel block
        # of size 3 at block index 0 means channels >= 3 are never DMA'd.
        rows = hw // _LANES
        xv = x.reshape(B, C, rows, _LANES)
        batch_tile, row_tile = _choose_tiles_lane_dense(B, rows, sublane_mult)
        grid = (pl.cdiv(B, batch_tile), pl.cdiv(rows, row_tile))
        # pipeline_mode=pl.Buffered(3) is a cheap knob to sweep on v7x if an
        # xprof trace shows exposed DMA at block boundaries.
        in_spec = pl.BlockSpec(
            (batch_tile, 3, row_tile, _LANES), lambda bi, ri: (bi, 0, ri, 0)
        )
        out_spec = pl.BlockSpec(
            (batch_tile, 1, row_tile, _LANES), lambda bi, ri: (bi, 0, ri, 0)
        )
        out_shape = jax.ShapeDtypeStruct((B, 1, rows, _LANES), dtype)
        in_channels = 3
    else:
        # Ragged spatial extent: no pad / no slice materialization.  Keep the
        # full channel extent in the block so the sublane tiling constraint is
        # satisfied; channels >= 3 are read but ignored -- still much less HBM
        # traffic than a padded round-trip over the whole tensor.
        xv = x.reshape(B, C, hw)
        batch_tile, hw_tile = _choose_tiles_flat(B, hw)
        grid = (pl.cdiv(B, batch_tile), pl.cdiv(hw, hw_tile))
        in_spec = pl.BlockSpec(
            (batch_tile, C, hw_tile), lambda bi, hi: (bi, 0, hi)
        )
        out_spec = pl.BlockSpec(
            (batch_tile, 1, hw_tile), lambda bi, hi: (bi, 0, hi)
        )
        out_shape = jax.ShapeDtypeStruct((B, 1, hw), dtype)
        in_channels = C

    out = pl.pallas_call(
        kernel,
        out_shape=out_shape,
        grid_spec=pltpu.PrefetchScalarGridSpec(
            num_scalar_prefetch=0,
            grid=grid,
            in_specs=[in_spec],
            out_specs=out_spec,
        ),
        compiler_params=pltpu.CompilerParams(
            dimension_semantics=("parallel", "parallel"),
            vmem_limit_bytes=_VMEM_LIMIT_BYTES,
        ),
        cost_estimate=pl.CostEstimate(
            flops=6 * n_out,
            transcendentals=2 * n_out,  # exp + reciprocal
            bytes_accessed=(in_channels + 1) * n_out * itemsize,
        ),
    )(xv)

    return out.reshape(B, 1, H, W)


def _reference(x: jax.Array, mode: int = 0) -> jax.Array:
    eps = 1e-07
    g = jnp.exp(-(((x[:, 0] - x[:, 1]) / (eps + x[:, 2])) ** 2) / 2)
    if mode:
        g = g * 2 - 1
    return g[:, None, :, :]


if __name__ == "__main__":
    key = jax.random.PRNGKey(0)
    B, C, H, W = 2, 4, 16, 16  # C >= 3 required (channels 0,1,2 used)
    x = jax.random.normal(key, (B, C, H, W), dtype=jnp.float32)
    # Keep the sigma channel bounded away from -eps, matching typical usage.
    x = x.at[:, 2].set(jnp.abs(x[:, 2]) + 0.1)

    out = jax.block_until_ready(gaussian_meta_mixture(x, mode=0))
    ref = _reference(x, mode=0)
    assert out.shape == (B, 1, H, W), out.shape
    assert jnp.allclose(out, ref, atol=1e-5, rtol=1e-5), "mismatch vs reference"

    out1 = jax.block_until_ready(gaussian_meta_mixture(x, mode=1))
    ref1 = _reference(x, mode=1)
    assert jnp.allclose(out1, ref1, atol=1e-5, rtol=1e-5), "mismatch (mode=1)"

    # Ragged spatial extent (H*W not a multiple of 128) exercises the
    # no-pad fallback path.
    Hr, Wr = 10, 10
    xr = jax.random.normal(jax.random.PRNGKey(1), (B, C, Hr, Wr), jnp.float32)
    xr = xr.at[:, 2].set(jnp.abs(xr[:, 2]) + 0.1)
    outr = jax.block_until_ready(gaussian_meta_mixture(xr, mode=0))
    refr = _reference(xr, mode=0)
    assert outr.shape == (B, 1, Hr, Wr), outr.shape
    assert jnp.allclose(outr, refr, atol=1e-5, rtol=1e-5), "mismatch (ragged)"

    print("KERNEL_OK")
</pallas_src>

<mosaic_0001>
module attributes {stable_mosaic.version = 11 : i64} {
  func.func @_gaussian_meta_mixture_kernel(%arg0: i32, %arg1: i32, %arg2: memref<2x3x2x128xf32, #tpu.memory_space<vmem>>, %arg3: memref<2x1x2x128xf32, #tpu.memory_space<vmem>>) attributes {dimension_semantics = [#tpu.dimension_semantics<parallel>, #tpu.dimension_semantics<parallel>], iteration_bounds = array<i64: 1, 1>, scalar_prefetch = 0 : i64, scratch_operands = 0 : i64, tpu.core_type = #tpu.core_type<tc>, window_params = [{transform_indices = @transform_0, window_bounds = array<i64: 2, 3, 2, 128>}, {transform_indices = @transform_1, window_bounds = array<i64: 2, 1, 2, 128>}]} {
    %c0 = arith.constant 0 : index
    %c0_0 = arith.constant 0 : index
    %c0_1 = arith.constant 0 : index
    %c0_2 = arith.constant 0 : index
    %0 = vector.load %arg2[%c0, %c0_0, %c0_1, %c0_2] : memref<2x3x2x128xf32, #tpu.memory_space<vmem>>, vector<2x1x2x128xf32>
    %c0_3 = arith.constant 0 : index
    %c1 = arith.constant 1 : index
    %c0_4 = arith.constant 0 : index
    %c0_5 = arith.constant 0 : index
    %1 = vector.load %arg2[%c0_3, %c1, %c0_4, %c0_5] : memref<2x3x2x128xf32, #tpu.memory_space<vmem>>, vector<2x1x2x128xf32>
    %c0_6 = arith.constant 0 : index
    %c2 = arith.constant 2 : index
    %c0_7 = arith.constant 0 : index
    %c0_8 = arith.constant 0 : index
    %2 = vector.load %arg2[%c0_6, %c2, %c0_7, %c0_8] : memref<2x3x2x128xf32, #tpu.memory_space<vmem>>, vector<2x1x2x128xf32>
    %3 = arith.subf %0, %1 : vector<2x1x2x128xf32>
    %cst = arith.constant 1.000000e-07 : f32
    %4 = vector.broadcast %cst : f32 to vector<2x1x2x128xf32>
    %5 = arith.addf %2, %4 : vector<2x1x2x128xf32>
    %6 = tpu.reciprocal %5 : vector<2x1x2x128xf32> -> vector<2x1x2x128xf32>
    %7 = arith.mulf %3, %6 : vector<2x1x2x128xf32>
    %8 = arith.mulf %7, %7 : vector<2x1x2x128xf32>
    %cst_9 = arith.constant -5.000000e-01 : f32
    %9 = vector.broadcast %cst_9 : f32 to vector<2x1x2x128xf32>
    %10 = arith.mulf %8, %9 : vector<2x1x2x128xf32>
    %11 = math.exp %10 : vector<2x1x2x128xf32>
    %c0_10 = arith.constant 0 : index
    %c0_11 = arith.constant 0 : index
    %c0_12 = arith.constant 0 : index
    %c0_13 = arith.constant 0 : index
    %12 = vector.load %arg3[%c0_10, %c0_11, %c0_12, %c0_13] : memref<2x1x2x128xf32, #tpu.memory_space<vmem>>, vector<2x1x2x128xf32>
    tpu.vector_store %arg3[%c0_10, %c0_11, %c0_12, %c0_13], %11 {strides = array<i32>} : memref<2x1x2x128xf32, #tpu.memory_space<vmem>>, vector<2x1x2x128xf32>,
    return
  }
  func.func @transform_0(%arg0: i32, %arg1: i32) -> (i32, i32, i32, i32) {
    %c0_i32 = arith.constant 0 : i32
    %c0_i32_0 = arith.constant 0 : i32
    %c0_i32_1 = arith.constant 0 : i32
    return %arg0, %c0_i32, %arg1, %c0_i32_0 : i32, i32, i32, i32
  }
  func.func @transform_1(%arg0: i32, %arg1: i32) -> (i32, i32, i32, i32) {
    %c0_i32 = arith.constant 0 : i32
    %c0_i32_0 = arith.constant 0 : i32
    %c0_i32_1 = arith.constant 0 : i32
    return %arg0, %c0_i32, %arg1, %c0_i32_0 : i32, i32, i32, i32
  }
}

</mosaic_0001>

<bundles_post_ra>
// kernel: tpu_custom_call.1
= control target key start
LH: loop header
LB: loop body
LE: loop exit
PB: predicated region body
PF: predicated region fallthrough
CT: control target
= control target key end

     0   :  { %6 = vsyncpa [#allocation3], 0  ;;  %s174_s0 = inlined_call_operand.hbm [shape: f32[2,4,2,128], index: 0, kind: input, shape index: {}]   ;;  %s175_s1 = inlined_call_operand.hbm [shape: f32[2,1,2,128], index: 1, kind: output, shape index: {}]  }
   0x1   :  { %7 = vsyncpa [#allocation4], 0 }
   0x2   :  { %s17_s6 = sld [smem:[#allocation0]]   ;;  %s138_s7 = smov [#allocation2]  }
   0x3   :  { %s25_s8 = sshll.u32 %s138_s7, 4  ;;  %s139_s9 = smov 128   ;;  %s26_s8 = int_to_ptr.vmem [resolvable:$true] %s25_s8 }
   0x4   :  { %32 = sst [smem:[#allocation7]] %s139_s9  ;;  %s140_s10 = smov 96  }
   0x5   :  { %34 = sst [smem:[#allocation7 + $0x1]] %s140_s10  ;;  %s141_s11 = smov 3  }
   0x6   :  { %36 = sst [smem:[#allocation7 + $0x2]] %s141_s11  ;;  %s142_s13 = smov 32  }
   0x7   :  { %38 = sst [smem:[#allocation7 + $0x3]] %s142_s13  ;;  %s143_s15 = smov 2  }
   0x8   :  { %s91_s12 = sshll.u32 %s17_s6, 26  ;;  %40 = sst [smem:[#allocation7 + $0x4]] %s142_s13 }
   0x9   :  { %s92_s14 = sadd.s32 134217728, %s91_s12  ;;  %42 = sst [smem:[#allocation7 + $0x5]] %s143_s15 }
   0xa   :  { %s144_s16 = smov [#allocation3]   ;;  %s145_s17 = smov [#allocation6]  }
   0xb   :  { %44 = dma.general %s174_s0, 192, %s26_s8, %s144_s16, %s145_s17, [#allocation7], %s92_s14, 0  }
   0xc   :  { %134 = dma.done.wait [#allocation3], 192  }
   0xd   :  { %135 = vsyncadd [#allocation3], 4294967104  ;;  %v54_v0 = vld [vmem:[#allocation2 + $0x4] sm:$0x3]  ;;  %v55_v2 = vld [vmem:[#allocation2 + $0xa] sm:$0x3] }
   0xe   :  { %v58_v1 = vadd.f32 1e-07, %v54_v0  ;;  %v59_v3 = vadd.f32 1e-07, %v55_v2  ;;  %v48_v4 = vld [vmem:[#allocation2] sm:$0x3] }
   0xf   :  { %v51_v5 = vld [vmem:[#allocation2 + $0x2] sm:$0x3]  ;;  %v49_v6 = vld [vmem:[#allocation2 + $0x6] sm:$0x3]  ;;  %v52_v7 = vld [vmem:[#allocation2 + $0x8] sm:$0x3] }
  0x10   :  { %104 = vrcp.f32 %v58_v1  ;;  %v56_v8 = vsub.f32 %v48_v4, %v51_v5  ;;  %v57_v9 = vsub.f32 %v49_v6, %v52_v7  ;;  %s146_s0 = smov [#allocation5]  }
  0x11   :  { %106 = vrcp.f32 %v59_v3  ;;  %s79_s20 = sshll.u32 %s146_s0, 4  ;;  %s80_s20 = int_to_ptr.vmem [resolvable:$true] %s79_s20 }
  0x12   :  { %s112_s21 = scalar_lea.vmem %s80_s20, 64  ;;  %p117_p1 = scmp.lt.s32.totalorder %s80_s20, %s80_s20 }
  0x13   :  { %p113_p0 = scmp.ne.s32.totalorder %s80_s20, %s112_s21  ;;  %p118_p2 = scmp.lt.s32.totalorder %s112_s21, %s112_s21 }
  0x15   :  { %p119_p3 = por %p118_p2, %p117_p1 }
  0x17   :  { %p120_p4 = pnand %p119_p3, %p113_p0 }
  0x1a   :  { %v105_v10 = vpop.eup %104 }
  0x1b   :  { %v62_v11 = vmul.f32 %v105_v10, %v56_v8  ;;  %v107_v12 = vpop.eup %106 }
  0x1c   :  { %v63_v14 = vmul.f32 %v107_v12, %v57_v9 }
  0x1d   :  { %v64_v13 = vmul.f32 %v62_v11, %v62_v11 }
  0x1e   :  { %v65_v16 = vmul.f32 %v63_v14, %v63_v14 }
  0x1f   :  { %v66_v15 = vmul.f32 -0.5, %v64_v13 }
  0x20   :  { %v67_v18 = vmul.f32 -0.5, %v65_v16 }
  0x21   :  { %v68_v17 = vmul.f32 1.442695, %v66_v15 }
  0x22   :  { %v70_v19 = vmul.f32 1.442695, %v67_v18 }
  0x23   :  { %108 = vpow2.f32 %v68_v17 }
  0x24   :  { %110 = vpow2.f32 %v70_v19 }
  0x2d   :  { %v109_v20 = vpop.eup %108 }
  0x2e   :  { %72 = vst [vmem:[#allocation5] sm:$0x3] %v109_v20  ;;  %v111_v21 = vpop.eup %110 }
  0x2f   :  { %73 = vst [vmem:[#allocation5 + $0x2] sm:$0x3] %v111_v21 }
  0x30   :  { %123 = shalt.err (!%p120_p4)
}
  0x31   :  { %s124_s24 = scalar_lea.hbm %s175_s1, 64 }
  0x32   :  { %p125_p5 = scmp.ne.s32.totalorder %s175_s1, %s124_s24  ;;  %p128_p6 = scmp.lt.u32.totalorder %s124_s24, %s175_s1 }
  0x34   :  { %p130_p7 = pnand %p128_p6, %p125_p5 }
  0x36   :  { %133 = shalt.err (!%p130_p7)
}
  0x37   :  { %s147_s29 = smov 32   ;;  %s148_s30 = smov 2  }
  0x38   :  { %85 = dma.vmem_to_hbm [thread:$0]  %s80_s20, 64, %s175_s1, [#allocation4], %s147_s29, %s147_s29, %s148_s30  }
  0x39   :  { %136 = dma.done.wait [#allocation4], 64  }
  0x3a   :  { %137 = vsyncadd [#allocation4], 4294967232 }
  0x3b   :  { %89 = vsyncpa [#allocation3], 1 }
  0x3c   :  { %90 = vsyncpa [#allocation4], 1 }

</bundles_post_ra>
